<compile_context>
chip_gen: v7x
topology: tpu7x:2x2x1
jax: 0.10.0
libtpu: 0.0.40
codegen_flags: <defaults>
</compile_context>

<pallas_src>
import functools

import jax
import jax.numpy as jnp
import numpy as np
from jax.experimental import pallas as pl
from jax.experimental.pallas import tpu as pltpu


# ---------------------------------------------------------------------------
# constants / helpers
# ---------------------------------------------------------------------------
_LANE = 128        # lane width (last dim)
_SUBLANE = 8       # f32 sublane quantum (2nd-to-last dim)
_MASK_NEG = -1e30  # additive mask value for invalid conv-output rows

_FUSE_GATHER_MAX_VOCAB = 1024             # one-hot MXU gather only for small vocab
_FUSE_GATHER_MAX_TABLE_BYTES = 2 << 20    # and a VMEM-resident table


def _round_up(x: int, m: int) -> int:
    return ((x + m - 1) // m) * m


def _vmem_limit_bytes() -> int:
    """Generation-aware scoped-VMEM request (leave headroom for compiler scratch)."""
    cap = 64 * 1024 * 1024                 # conservative default (v7x per-core VMEM)
    try:
        cap = int(pltpu.get_tpu_info().vmem_capacity_bytes)
    except Exception:
        pass
    # v7x (64 MiB)  -> 32 MiB limit; v5e/v6e (128 MiB) -> 64 MiB limit.
    return min(max(cap // 2, 32 * 1024 * 1024), 80 * 1024 * 1024)


def _pick_batch_tile(batch, l_pad, emb_dim, n_total, v_pad_onehot,
                     vmem_limit, resident_bytes):
    """Batch tile from a per-step activation VMEM budget (double buffers included)."""
    act_budget = min(20 * 1024 * 1024, vmem_limit // 2) - resident_bytes
    act_budget = max(act_budget, 2 * 1024 * 1024)
    per_sample = l_pad * (
        1024                      # (m,1) int32 token tile rows (512 B each, 2 bufs)
        + 2 * v_pad_onehot        # one-hot bf16 intermediate (fused-gather path)
        + 6 * emb_dim             # gathered f32 rows + zero-extended copy + bf16 cast
        + 12 * n_total            # conv accumulator + affine/mask/ReLU f32 temps
    )
    bt = max(_SUBLANE, (act_budget // per_sample) // _SUBLANE * _SUBLANE)
    bt = min(bt, _round_up(batch, _SUBLANE))
    # Keep >= 2 grid steps for reasonable batches so a 2-TensorCore chip (v7x) can
    # shard the "parallel" batch axis; negligible cost (~0.35 us) on 1-TC chips.
    if batch >= 2 * _SUBLANE:
        bt = min(bt, _round_up(-(-batch // 2), _SUBLANE))
    return bt


# ---------------------------------------------------------------------------
# Kernel bodies
# ---------------------------------------------------------------------------
def _conv_and_head(x2f, wconv_ref, scale_ref, shift_ref, mask_ref,
                   w1_ref, s1_ref, t1_ref, w2_ref, b2_ref, out_ref,
                   *, batch_tile, l_pad):
    """Shared conv branches + projection head, given the gathered (bt*L, E) f32."""
    m0, emb_dim = x2f.shape
    k_max = wconv_ref.shape[0]
    n_total = wconv_ref.shape[-1]

    # Zero-extend the flattened (bt*L, E) activation by a whole sublane tile so
    # every conv tap j is a static slice x_ext[j : j+m0] (row p of tap j = x[p+j]).
    if k_max > 1:
        pad_rows = _round_up(k_max - 1, _SUBLANE)
        x_ext = jnp.concatenate(
            [x2f, jnp.zeros((pad_rows, emb_dim), jnp.float32)], axis=0)
    else:
        x_ext = x2f

    # One stacked-RHS matmul per tap: RHS (E, nbr*F_pad) holds every branch's
    # tap-j filters side by side (branches with k_i <= j have zero columns),
    # so N >= 256 and there are k_max matmuls instead of sum(k_i).
    acc = jnp.zeros((m0, n_total), jnp.float32)
    for j in range(k_max):
        lhs = x_ext[j:j + m0, :].astype(jnp.bfloat16)
        acc = acc + jnp.dot(lhs, wconv_ref[j],
                            preferred_element_type=jnp.float32)

    # Folded eval-mode BatchNorm (+ conv bias), additive time-validity mask
    # (0 valid / -1e30 for wrapped, padded, or incomplete windows), ReLU, max-pool.
    y = acc * scale_ref[...] + shift_ref[...]
    y = jnp.maximum(y.reshape(batch_tile, l_pad, n_total) + mask_ref[...], 0.0)
    x0 = jnp.max(y, axis=1)                                   # (bt, nbr*F_pad)

    # Projection head: Linear -> BN(eval, folded) -> ReLU -> Linear.
    # Dropout(p=0.0) is the identity.
    h = jnp.dot(x0.astype(jnp.bfloat16), w1_ref[...],
                preferred_element_type=jnp.float32)
    h = jnp.maximum(h * s1_ref[...] + t1_ref[...], 0.0)
    out_ref[...] = jnp.dot(h.astype(jnp.bfloat16), w2_ref[...],
                           preferred_element_type=jnp.float32) + b2_ref[...]


def _cnn_fused_gather_kernel(tok_ref, table_ref, wconv_ref, scale_ref, shift_ref,
                             mask_ref, w1_ref, s1_ref, t1_ref, w2_ref, b2_ref,
                             out_ref, *, batch_tile, l_pad):
    """Fused embedding gather (one-hot MXU matmul) + conv branches + head."""
    m0 = tok_ref.shape[0]
    v_pad = table_ref.shape[0]
    tok = tok_ref[...]                                         # (bt*L, 1) int32
    vid = jax.lax.broadcasted_iota(jnp.int32, (m0, v_pad), 1)
    onehot = jnp.where(tok == vid, 1.0, 0.0).astype(jnp.bfloat16)
    # One-hot rows pick embedding rows; token 0 hits the zero row (padding_idx=0)
    # and batch/time-padding tokens (also 0) therefore contribute zeros.
    x2f = jnp.dot(onehot, table_ref[...], preferred_element_type=jnp.float32)
    _conv_and_head(x2f, wconv_ref, scale_ref, shift_ref, mask_ref,
                   w1_ref, s1_ref, t1_ref, w2_ref, b2_ref, out_ref,
                   batch_tile=batch_tile, l_pad=l_pad)


def _cnn_pregathered_kernel(emb_ref, wconv_ref, scale_ref, shift_ref, mask_ref,
                            w1_ref, s1_ref, t1_ref, w2_ref, b2_ref, out_ref,
                            *, batch_tile, l_pad):
    """Fallback for large vocabularies: embedding gathered by XLA outside."""
    x2f = emb_ref[...].astype(jnp.float32)                     # (bt*L, E)
    _conv_and_head(x2f, wconv_ref, scale_ref, shift_ref, mask_ref,
                   w1_ref, s1_ref, t1_ref, w2_ref, b2_ref, out_ref,
                   batch_tile=batch_tile, l_pad=l_pad)


# ---------------------------------------------------------------------------
# Parameters (deterministic kaiming init; eval-mode BN folded, lane-padded, bf16)
# ---------------------------------------------------------------------------
def init_params(key, vocab_size, embedding_size, n_classes, kernel_sizes_cnn,
                filters_cnn, dense_size, *, eps=1e-5, param_dtype=jnp.bfloat16):
    kernel_sizes = tuple(int(k) for k in kernel_sizes_cnn)
    nbr = len(kernel_sizes)
    k_max = max(kernel_sizes)
    f_pad = _round_up(filters_cnn, _LANE)
    d_pad = _round_up(dense_size, _LANE)
    c_pad = _round_up(n_classes, _LANE)
    v_pad = _round_up(vocab_size, _LANE)
    n_total = nbr * f_pad

    keys = jax.random.split(key, 3 + 2 * nbr)
    kit = iter(keys)

    def kaiming(k, shape, fan_in):
        return jax.random.normal(k, shape, jnp.float32) * np.sqrt(2.0 / fan_in)

    # Embedding, padding_idx=0 -> zero row; zero rows pad vocab to a lane multiple.
    emb = jax.random.normal(next(kit), (vocab_size, embedding_size), jnp.float32)
    emb = emb.at[0].set(0.0)
    emb = jnp.pad(emb, ((0, v_pad - vocab_size), (0, 0)))

    # Eval-mode BatchNorm: gamma=1, beta=0, running_mean=0, running_var=1.
    bn_scale = 1.0 / np.sqrt(1.0 + eps)

    # Combined conv RHS per tap: (k_max, E, nbr*F_pad); branch i occupies column
    # block [i*F_pad, i*F_pad+filters); taps j >= k_i stay zero.
    wconv = jnp.zeros((k_max, embedding_size, n_total), jnp.float32)
    scale = jnp.zeros((1, n_total), jnp.float32)
    shift = jnp.zeros((1, n_total), jnp.float32)
    for i, k in enumerate(kernel_sizes):
        w = kaiming(next(kit), (k, embedding_size, filters_cnn),
                    embedding_size * k)                  # PyTorch (F,E,k) transposed
        b = 0.01 * jax.random.normal(next(kit), (filters_cnn,), jnp.float32)
        c0 = i * f_pad
        wconv = wconv.at[:k, :, c0:c0 + filters_cnn].set(w)
        scale = scale.at[0, c0:c0 + filters_cnn].set(bn_scale)
        shift = shift.at[0, c0:c0 + filters_cnn].set(b * bn_scale)   # conv bias folded

    # Projection: Linear(nbr*F -> dense) -> BN -> ReLU -> Linear(dense -> classes).
    w1 = kaiming(next(kit), (nbr * filters_cnn, dense_size), nbr * filters_cnn)
    w1p = jnp.zeros((n_total, d_pad), jnp.float32)
    for i in range(nbr):
        w1p = w1p.at[i * f_pad:i * f_pad + filters_cnn, :dense_size].set(
            w1[i * filters_cnn:(i + 1) * filters_cnn])
    s1 = jnp.zeros((1, d_pad), jnp.float32).at[0, :dense_size].set(bn_scale)
    t1 = jnp.zeros((1, d_pad), jnp.float32)              # linear bias 0, BN beta 0

    w2 = kaiming(next(kit), (dense_size, n_classes), dense_size)
    w2p = jnp.zeros((d_pad, c_pad), jnp.float32).at[:dense_size, :n_classes].set(w2)
    b2 = jnp.zeros((1, c_pad), jnp.float32)

    return {
        "kernel_sizes": kernel_sizes,
        "n_classes": int(n_classes),
        "filters_pad": int(f_pad),
        "embedding": emb.astype(param_dtype),            # (v_pad, E) bf16, row0 zero
        "conv_w": wconv.astype(param_dtype),             # (k_max, E, nbr*F_pad) bf16
        "bn_scale": scale,                               # (1, nbr*F_pad) f32
        "bn_shift": shift,                               # (1, nbr*F_pad) f32
        "proj": (w1p.astype(param_dtype), s1, t1, w2p.astype(param_dtype), b2),
    }


# ---------------------------------------------------------------------------
# Forward pass
# ---------------------------------------------------------------------------
def cnn_forward(tokens, params):
    """tokens: (B, L) int32 -> logits (B, n_classes) float32."""
    kernel_sizes = params["kernel_sizes"]
    k_max = max(kernel_sizes)
    n_classes = params["n_classes"]
    f_pad = params["filters_pad"]
    table = params["embedding"]
    wconv = params["conv_w"]
    scale, shift = params["bn_scale"], params["bn_shift"]
    w1, s1, t1, w2, b2 = params["proj"]

    batch, seq_len = tokens.shape
    if seq_len < k_max:
        raise ValueError(f"sequence length {seq_len} is shorter than the largest "
                         f"conv kernel size {k_max}")
    v_pad, emb_dim = table.shape
    n_total = wconv.shape[-1]
    c_pad = w2.shape[-1]
    l_pad = _round_up(seq_len, _SUBLANE)

    # Additive time-validity mask (0 valid / -1e30 invalid) per branch lane block;
    # built once on the host, added before the ReLU inside the kernel.
    mask_np = np.zeros((1, l_pad, n_total), np.float32)
    for i, k in enumerate(kernel_sizes):
        mask_np[0, seq_len - k + 1:, i * f_pad:(i + 1) * f_pad] = _MASK_NEG
    mask = jnp.asarray(mask_np)

    vmem_limit = _vmem_limit_bytes()
    fuse_gather = (v_pad <= _FUSE_GATHER_MAX_VOCAB and
                   int(table.size) * table.dtype.itemsize
                   <= _FUSE_GATHER_MAX_TABLE_BYTES)

    weight_args = (wconv, scale, shift, mask, w1, s1, t1, w2, b2)
    resident = 2 * sum(int(a.size) * a.dtype.itemsize for a in weight_args)
    if fuse_gather:
        resident += 2 * int(table.size) * table.dtype.itemsize

    b_tile = _pick_batch_tile(batch, l_pad, emb_dim, n_total,
                              v_pad if fuse_gather else 0, vmem_limit, resident)
    b_pad = _round_up(batch, b_tile)
    grid = (b_pad // b_tile,)

    # Pad batch and time with token 0 (padding_idx -> zero embedding row).
    tok = jnp.pad(tokens.astype(jnp.int32),
                  ((0, b_pad - batch), (0, l_pad - seq_len)))

    def _full_spec(arr):          # small parameter array, fully resident in VMEM
        nd = arr.ndim
        return pl.BlockSpec(arr.shape, lambda i, _nd=nd: (0,) * _nd)

    weight_specs = [_full_spec(a) for a in weight_args]
    out_spec = pl.BlockSpec((b_tile, c_pad), lambda i: (i, 0))
    out_shape = jax.ShapeDtypeStruct((b_pad, c_pad), jnp.float32)
    cparams = pltpu.CompilerParams(dimension_semantics=("parallel",),
                                   vmem_limit_bytes=vmem_limit)

    if fuse_gather:
        tok2d = tok.reshape(b_pad * l_pad, 1)
        kernel = functools.partial(_cnn_fused_gather_kernel,
                                   batch_tile=b_tile, l_pad=l_pad)
        in_specs = [pl.BlockSpec((b_tile * l_pad, 1), lambda i: (i, 0)),
                    _full_spec(table)] + weight_specs
        out = pl.pallas_call(
            kernel, grid=grid, in_specs=in_specs, out_specs=out_spec,
            out_shape=out_shape, compiler_params=cparams,
        )(tok2d, table, *weight_args)
    else:
        # TODO(synk): large-vocab path still gathers via XLA and round-trips the
        # (B, L, E) activation through HBM; replace with an in-kernel per-row DMA
        # gather from an HBM-resident table (scalar-prefetched tokens +
        # pltpu.make_async_copy).
        emb = jnp.take(table, tok, axis=0)                 # (b_pad, l_pad, E) bf16
        emb2d = emb.reshape(b_pad * l_pad, emb_dim)
        kernel = functools.partial(_cnn_pregathered_kernel,
                                   batch_tile=b_tile, l_pad=l_pad)
        in_specs = [pl.BlockSpec((b_tile * l_pad, emb_dim), lambda i: (i, 0))]
        in_specs += weight_specs
        out = pl.pallas_call(
            kernel, grid=grid, in_specs=in_specs, out_specs=out_spec,
            out_shape=out_shape, compiler_params=cparams,
        )(emb2d, *weight_args)

    return out[:batch, :n_classes]


# ---------------------------------------------------------------------------
# Pure-JAX reference (same padded bf16 params / dtypes) for a correctness check
# ---------------------------------------------------------------------------
def cnn_forward_reference(tokens, params):
    kernel_sizes = params["kernel_sizes"]
    f_pad = params["filters_pad"]
    table = params["embedding"]
    wconv = params["conv_w"]
    scale, shift = params["bn_scale"], params["bn_shift"]
    w1, s1, t1, w2, b2 = params["proj"]

    B, L = tokens.shape
    emb = jnp.take(table, tokens, axis=0)                  # (B, L, E) bf16
    pooled = []
    for i, k in enumerate(kernel_sizes):
        lo = L - k + 1
        c0 = i * f_pad
        acc = jnp.zeros((B, lo, f_pad), jnp.float32)
        for j in range(k):
            acc = acc + jax.lax.dot_general(
                emb[:, j:j + lo, :], wconv[j, :, c0:c0 + f_pad],
                dimension_numbers=(((2,), (0,)), ((), ())),
                preferred_element_type=jnp.float32)
        y = jnp.maximum(acc * scale[:, c0:c0 + f_pad] + shift[:, c0:c0 + f_pad], 0.0)
        pooled.append(jnp.max(y, axis=1))
    x0 = pooled[0] if len(pooled) == 1 else jnp.concatenate(pooled, axis=-1)
    h = jnp.dot(x0.astype(jnp.bfloat16), w1, preferred_element_type=jnp.float32)
    h = jnp.maximum(h * s1 + t1, 0.0)
    logits = jnp.dot(h.astype(jnp.bfloat16), w2,
                     preferred_element_type=jnp.float32) + b2
    return logits[:, :params["n_classes"]]


# ---------------------------------------------------------------------------
if __name__ == "__main__":
    vocab_size = 50
    embedding_size = 32
    n_classes = 4
    kernel_sizes_cnn = [2, 3]
    filters_cnn = 16
    dense_size = 32
    batch, seq_len = 2, 8

    key = jax.random.PRNGKey(0)
    pkey, xkey = jax.random.split(key)
    params = init_params(pkey, vocab_size, embedding_size, n_classes,
                         kernel_sizes_cnn, filters_cnn, dense_size)
    tokens = jax.random.randint(xkey, (batch, seq_len), 0, vocab_size,
                                dtype=jnp.int32)
    tokens = tokens.at[0, -1].set(0)          # exercise padding_idx=0

    logits = jax.jit(lambda t: cnn_forward(t, params))(tokens)
    jax.block_until_ready(logits)
    assert logits.shape == (batch, n_classes)

    # Tolerance check against a pure-JAX reference using the same bf16 params.
    ref = cnn_forward_reference(tokens, params)
    np.testing.assert_allclose(np.asarray(logits), np.asarray(ref),
                               rtol=5e-2, atol=5e-3)
    print("KERNEL_OK")
</pallas_src>

<mosaic_0001>
module attributes {stable_mosaic.version = 11 : i64} {
  func.func @_cnn_fused_gather_kernel(%arg0: i32, %arg1: memref<64x1xi32, #tpu.memory_space<vmem>>, %arg2: memref<128x32xbf16, #tpu.memory_space<vmem>>, %arg3: memref<3x32x256xbf16, #tpu.memory_space<vmem>>, %arg4: memref<1x256xf32, #tpu.memory_space<vmem>>, %arg5: memref<1x256xf32, #tpu.memory_space<vmem>>, %arg6: memref<1x8x256xf32, #tpu.memory_space<vmem>>, %arg7: memref<256x128xbf16, #tpu.memory_space<vmem>>, %arg8: memref<1x128xf32, #tpu.memory_space<vmem>>, %arg9: memref<1x128xf32, #tpu.memory_space<vmem>>, %arg10: memref<128x128xbf16, #tpu.memory_space<vmem>>, %arg11: memref<1x128xf32, #tpu.memory_space<vmem>>, %arg12: memref<8x128xf32, #tpu.memory_space<vmem>>) attributes {dimension_semantics = [#tpu.dimension_semantics<parallel>], iteration_bounds = array<i64: 1>, scalar_prefetch = 0 : i64, scratch_operands = 0 : i64, tpu.core_type = #tpu.core_type<tc>, window_params = [{transform_indices = @transform_0, window_bounds = array<i64: 64, 1>}, {pipeline_mode = #tpu.pipeline_mode<synchronous>, transform_indices = @transform_1, window_bounds = array<i64: 128, 32>}, {pipeline_mode = #tpu.pipeline_mode<synchronous>, transform_indices = @transform_2, window_bounds = array<i64: 3, 32, 256>}, {pipeline_mode = #tpu.pipeline_mode<synchronous>, transform_indices = @transform_3, window_bounds = array<i64: 1, 256>}, {pipeline_mode = #tpu.pipeline_mode<synchronous>, transform_indices = @transform_4, window_bounds = array<i64: 1, 256>}, {pipeline_mode = #tpu.pipeline_mode<synchronous>, transform_indices = @transform_5, window_bounds = array<i64: 1, 8, 256>}, {pipeline_mode = #tpu.pipeline_mode<synchronous>, transform_indices = @transform_6, window_bounds = array<i64: 256, 128>}, {pipeline_mode = #tpu.pipeline_mode<synchronous>, transform_indices = @transform_7, window_bounds = array<i64: 1, 128>}, {pipeline_mode = #tpu.pipeline_mode<synchronous>, transform_indices = @transform_8, window_bounds = array<i64: 1, 128>}, {pipeline_mode = #tpu.pipeline_mode<synchronous>, transform_indices = @transform_9, window_bounds = array<i64: 128, 128>}, {pipeline_mode = #tpu.pipeline_mode<synchronous>, transform_indices = @transform_10, window_bounds = array<i64: 1, 128>}, {transform_indices = @transform_11, window_bounds = array<i64: 8, 128>}]} {
    %c0 = arith.constant 0 : index
    %c0_0 = arith.constant 0 : index
    %0 = vector.load %arg1[%c0, %c0_0] : memref<64x1xi32, #tpu.memory_space<vmem>>, vector<64x1xi32>
    %1 = tpu.iota {dimensions = array<i32: 1>} : vector<64x128xi32>
    %2 = vector.broadcast %0 : vector<64x1xi32> to vector<64x128xi32>
    %3 = arith.cmpi eq, %2, %1 : vector<64x128xi32>
    %cst = arith.constant 1.000000e+00 : f32
    %cst_1 = arith.constant 0.000000e+00 : f32
    %4 = vector.broadcast %cst : f32 to vector<64x128xf32>
    %5 = vector.broadcast %cst_1 : f32 to vector<64x128xf32>
    %6 = arith.select %3, %4, %5 : vector<64x128xi1>, vector<64x128xf32>
    %7 = arith.truncf %6 : vector<64x128xf32> to vector<64x128xbf16>
    %c0_2 = arith.constant 0 : index
    %c0_3 = arith.constant 0 : index
    %8 = vector.load %arg2[%c0_2, %c0_3] : memref<128x32xbf16, #tpu.memory_space<vmem>>, vector<128x32xbf16>
    %cst_4 = arith.constant dense<0.000000e+00> : vector<64x32xf32>
    %9 = tpu.matmul %7, %8, %cst_4 {dimension_numbers = #tpu.dot_dimension_numbers<[1], [0], [0], [1], [0, 0, 1, 1], [], []>} : vector<64x128xbf16>, vector<128x32xbf16>, vector<64x32xf32> -> vector<64x32xf32>
    %cst_5 = arith.constant 0.000000e+00 : f32
    %10 = vector.broadcast %cst_5 : f32 to vector<8x32xf32>
    %11 = tpu.concatenate %9, %10 in 0 : vector<64x32xf32>, vector<8x32xf32> -> vector<72x32xf32>
    %cst_6 = arith.constant 0.000000e+00 : f32
    %12 = vector.broadcast %cst_6 : f32 to vector<64x256xf32>
    %13 = vector.extract_strided_slice %11 {offsets = [0, 0], sizes = [64, 32], strides = [1, 1]} : vector<72x32xf32> to vector<64x32xf32>
    %14 = arith.truncf %13 : vector<64x32xf32> to vector<64x32xbf16>
    %c0_7 = arith.constant 0 : index
    %c0_8 = arith.constant 0 : index
    %c0_9 = arith.constant 0 : index
    %15 = vector.load %arg3[%c0_7, %c0_8, %c0_9] : memref<3x32x256xbf16, #tpu.memory_space<vmem>>, vector<1x32x256xbf16>
    %16 = vector.shape_cast %15 : vector<1x32x256xbf16> to vector<32x256xbf16>
    %cst_10 = arith.constant dense<0.000000e+00> : vector<64x256xf32>
    %17 = tpu.matmul %14, %16, %cst_10 {dimension_numbers = #tpu.dot_dimension_numbers<[1], [0], [0], [1], [0, 0, 1, 1], [], []>} : vector<64x32xbf16>, vector<32x256xbf16>, vector<64x256xf32> -> vector<64x256xf32>
    %18 = arith.addf %12, %17 : vector<64x256xf32>
    %19 = vector.extract_strided_slice %11 {offsets = [1, 0], sizes = [64, 32], strides = [1, 1]} : vector<72x32xf32> to vector<64x32xf32>
    %20 = arith.truncf %19 : vector<64x32xf32> to vector<64x32xbf16>
    %c1 = arith.constant 1 : index
    %c0_11 = arith.constant 0 : index
    %c0_12 = arith.constant 0 : index
    %21 = vector.load %arg3[%c1, %c0_11, %c0_12] : memref<3x32x256xbf16, #tpu.memory_space<vmem>>, vector<1x32x256xbf16>
    %22 = vector.shape_cast %21 : vector<1x32x256xbf16> to vector<32x256xbf16>
    %cst_13 = arith.constant dense<0.000000e+00> : vector<64x256xf32>
    %23 = tpu.matmul %20, %22, %cst_13 {dimension_numbers = #tpu.dot_dimension_numbers<[1], [0], [0], [1], [0, 0, 1, 1], [], []>} : vector<64x32xbf16>, vector<32x256xbf16>, vector<64x256xf32> -> vector<64x256xf32>
    %24 = arith.addf %18, %23 : vector<64x256xf32>
    %25 = vector.extract_strided_slice %11 {offsets = [2, 0], sizes = [64, 32], strides = [1, 1]} : vector<72x32xf32> to vector<64x32xf32>
    %26 = arith.truncf %25 : vector<64x32xf32> to vector<64x32xbf16>
    %c2 = arith.constant 2 : index
    %c0_14 = arith.constant 0 : index
    %c0_15 = arith.constant 0 : index
    %27 = vector.load %arg3[%c2, %c0_14, %c0_15] : memref<3x32x256xbf16, #tpu.memory_space<vmem>>, vector<1x32x256xbf16>
    %28 = vector.shape_cast %27 : vector<1x32x256xbf16> to vector<32x256xbf16>
    %cst_16 = arith.constant dense<0.000000e+00> : vector<64x256xf32>
    %29 = tpu.matmul %26, %28, %cst_16 {dimension_numbers = #tpu.dot_dimension_numbers<[1], [0], [0], [1], [0, 0, 1, 1], [], []>} : vector<64x32xbf16>, vector<32x256xbf16>, vector<64x256xf32> -> vector<64x256xf32>
    %30 = arith.addf %24, %29 : vector<64x256xf32>
    %c0_17 = arith.constant 0 : index
    %c0_18 = arith.constant 0 : index
    %31 = vector.load %arg4[%c0_17, %c0_18] : memref<1x256xf32, #tpu.memory_space<vmem>>, vector<1x256xf32>
    %32 = vector.broadcast %31 : vector<1x256xf32> to vector<64x256xf32>
    %33 = arith.mulf %30, %32 : vector<64x256xf32>
    %c0_19 = arith.constant 0 : index
    %c0_20 = arith.constant 0 : index
    %34 = vector.load %arg5[%c0_19, %c0_20] : memref<1x256xf32, #tpu.memory_space<vmem>>, vector<1x256xf32>
    %35 = vector.broadcast %34 : vector<1x256xf32> to vector<64x256xf32>
    %36 = arith.addf %33, %35 : vector<64x256xf32>
    %37 = vector.shape_cast %36 : vector<64x256xf32> to vector<8x8x256xf32>
    %c0_21 = arith.constant 0 : index
    %c0_22 = arith.constant 0 : index
    %c0_23 = arith.constant 0 : index
    %38 = vector.load %arg6[%c0_21, %c0_22, %c0_23] : memref<1x8x256xf32, #tpu.memory_space<vmem>>, vector<1x8x256xf32>
    %39 = vector.broadcast %38 : vector<1x8x256xf32> to vector<8x8x256xf32>
    %40 = arith.addf %37, %39 : vector<8x8x256xf32>
    %cst_24 = arith.constant 0.000000e+00 : f32
    %41 = vector.broadcast %cst_24 : f32 to vector<8x8x256xf32>
    %42 = arith.maximumf %40, %41 : vector<8x8x256xf32>
    %cst_25 = arith.constant dense<0xFF800000> : vector<8x256xf32>
    %43 = vector.multi_reduction <maximumf>, %42, %cst_25 [1] : vector<8x8x256xf32> to vector<8x256xf32>
    %44 = arith.truncf %43 : vector<8x256xf32> to vector<8x256xbf16>
    %c0_26 = arith.constant 0 : index
    %c0_27 = arith.constant 0 : index
    %45 = vector.load %arg7[%c0_26, %c0_27] : memref<256x128xbf16, #tpu.memory_space<vmem>>, vector<256x128xbf16>
    %cst_28 = arith.constant dense<0.000000e+00> : vector<8x128xf32>
    %46 = tpu.matmul %44, %45, %cst_28 {dimension_numbers = #tpu.dot_dimension_numbers<[1], [0], [0], [1], [0, 0, 1, 1], [], []>} : vector<8x256xbf16>, vector<256x128xbf16>, vector<8x128xf32> -> vector<8x128xf32>
    %c0_29 = arith.constant 0 : index
    %c0_30 = arith.constant 0 : index
    %47 = vector.load %arg8[%c0_29, %c0_30] : memref<1x128xf32, #tpu.memory_space<vmem>>, vector<1x128xf32>
    %48 = vector.broadcast %47 : vector<1x128xf32> to vector<8x128xf32>
    %49 = arith.mulf %46, %48 : vector<8x128xf32>
    %c0_31 = arith.constant 0 : index
    %c0_32 = arith.constant 0 : index
    %50 = vector.load %arg9[%c0_31, %c0_32] : memref<1x128xf32, #tpu.memory_space<vmem>>, vector<1x128xf32>
    %51 = vector.broadcast %50 : vector<1x128xf32> to vector<8x128xf32>
    %52 = arith.addf %49, %51 : vector<8x128xf32>
    %cst_33 = arith.constant 0.000000e+00 : f32
    %53 = vector.broadcast %cst_33 : f32 to vector<8x128xf32>
    %54 = arith.maximumf %52, %53 : vector<8x128xf32>
    %55 = arith.truncf %54 : vector<8x128xf32> to vector<8x128xbf16>
    %c0_34 = arith.constant 0 : index
    %c0_35 = arith.constant 0 : index
    %56 = vector.load %arg10[%c0_34, %c0_35] : memref<128x128xbf16, #tpu.memory_space<vmem>>, vector<128x128xbf16>
    %cst_36 = arith.constant dense<0.000000e+00> : vector<8x128xf32>
    %57 = tpu.matmul %55, %56, %cst_36 {dimension_numbers = #tpu.dot_dimension_numbers<[1], [0], [0], [1], [0, 0, 1, 1], [], []>} : vector<8x128xbf16>, vector<128x128xbf16>, vector<8x128xf32> -> vector<8x128xf32>
    %c0_37 = arith.constant 0 : index
    %c0_38 = arith.constant 0 : index
    %58 = vector.load %arg11[%c0_37, %c0_38] : memref<1x128xf32, #tpu.memory_space<vmem>>, vector<1x128xf32>
    %59 = vector.broadcast %58 : vector<1x128xf32> to vector<8x128xf32>
    %60 = arith.addf %57, %59 : vector<8x128xf32>
    %c0_39 = arith.constant 0 : index
    %c0_40 = arith.constant 0 : index
    %61 = vector.load %arg12[%c0_39, %c0_40] : memref<8x128xf32, #tpu.memory_space<vmem>>, vector<8x128xf32>
    tpu.vector_store %arg12[%c0_39, %c0_40], %60 {strides = array<i32>} : memref<8x128xf32, #tpu.memory_space<vmem>>, vector<8x128xf32>,
    return
  }
  func.func @transform_0(%arg0: i32) -> (i32, i32) {
    %c0_i32 = arith.constant 0 : i32
    %c0_i32_0 = arith.constant 0 : i32
    return %arg0, %c0_i32 : i32, i32
  }
  func.func @transform_1(%arg0: i32) -> (i32, i32) {
    %c0_i32 = arith.constant 0 : i32
    %c0_i32_0 = arith.constant 0 : i32
    %c0_i32_1 = arith.constant 0 : i32
    return %c0_i32, %c0_i32_0 : i32, i32
  }
  func.func @transform_2(%arg0: i32) -> (i32, i32, i32) {
    %c0_i32 = arith.constant 0 : i32
    %c0_i32_0 = arith.constant 0 : i32
    %c0_i32_1 = arith.constant 0 : i32
    %c0_i32_2 = arith.constant 0 : i32
    return %c0_i32, %c0_i32_0, %c0_i32_1 : i32, i32, i32
  }
  func.func @transform_3(%arg0: i32) -> (i32, i32) {
    %c0_i32 = arith.constant 0 : i32
    %c0_i32_0 = arith.constant 0 : i32
    %c0_i32_1 = arith.constant 0 : i32
    return %c0_i32, %c0_i32_0 : i32, i32
  }
  func.func @transform_4(%arg0: i32) -> (i32, i32) {
    %c0_i32 = arith.constant 0 : i32
    %c0_i32_0 = arith.constant 0 : i32
    %c0_i32_1 = arith.constant 0 : i32
    return %c0_i32, %c0_i32_0 : i32, i32
  }
  func.func @transform_5(%arg0: i32) -> (i32, i32, i32) {
    %c0_i32 = arith.constant 0 : i32
    %c0_i32_0 = arith.constant 0 : i32
    %c0_i32_1 = arith.constant 0 : i32
    %c0_i32_2 = arith.constant 0 : i32
    return %c0_i32, %c0_i32_0, %c0_i32_1 : i32, i32, i32
  }
  func.func @transform_6(%arg0: i32) -> (i32, i32) {
    %c0_i32 = arith.constant 0 : i32
    %c0_i32_0 = arith.constant 0 : i32
    %c0_i32_1 = arith.constant 0 : i32
    return %c0_i32, %c0_i32_0 : i32, i32
  }
  func.func @transform_7(%arg0: i32) -> (i32, i32) {
    %c0_i32 = arith.constant 0 : i32
    %c0_i32_0 = arith.constant 0 : i32
    %c0_i32_1 = arith.constant 0 : i32
    return %c0_i32, %c0_i32_0 : i32, i32
  }
  func.func @transform_8(%arg0: i32) -> (i32, i32) {
    %c0_i32 = arith.constant 0 : i32
    %c0_i32_0 = arith.constant 0 : i32
    %c0_i32_1 = arith.constant 0 : i32
    return %c0_i32, %c0_i32_0 : i32, i32
  }
  func.func @transform_9(%arg0: i32) -> (i32, i32) {
    %c0_i32 = arith.constant 0 : i32
    %c0_i32_0 = arith.constant 0 : i32
    %c0_i32_1 = arith.constant 0 : i32
    return %c0_i32, %c0_i32_0 : i32, i32
  }
  func.func @transform_10(%arg0: i32) -> (i32, i32) {
    %c0_i32 = arith.constant 0 : i32
    %c0_i32_0 = arith.constant 0 : i32
    %c0_i32_1 = arith.constant 0 : i32
    return %c0_i32, %c0_i32_0 : i32, i32
  }
  func.func @transform_11(%arg0: i32) -> (i32, i32) {
    %c0_i32 = arith.constant 0 : i32
    %c0_i32_0 = arith.constant 0 : i32
    return %arg0, %c0_i32 : i32, i32
  }
}

</mosaic_0001>

<bundles_post_ra>
// kernel: _lambda_.1
= control target key start
LH: loop header
LB: loop body
LE: loop exit
PB: predicated region body
PF: predicated region fallthrough
CT: control target
= control target key end

     0   :  { %16 = vsyncpa [#allocation3], 0  ;;  %s1475_s17 = smov [#allocation2]   ;;  %s1848_s0 = inlined_call_operand.vmem [shape: s32[64,1], index: 0, kind: input, shape index: {}]   ;;  %s1849_s1 = inlined_call_operand.hbm [shape: bf16[128,32], index: 1, kind: input, shape index: {}]   ;;  %s1850_s2 = inlined_call_operand.vmem [shape: bf16[3,32,256], index: 2, kind: input, shape index: {}]   ;;  %s1851_s3 = inlined_call_operand.vmem [shape: f32[1,256], index: 3, kind: input, shape index: {}]   ;;  %s1852_s4 = inlined_call_operand.vmem [shape: f32[1,256], index: 4, kind: input, shape index: {}]   ;;  %s1853_s5 = inlined_call_operand.vmem [shape: f32[1,8,256], index: 5, kind: input, shape index: {}]   ;;  %s1854_s6 = inlined_call_operand.vmem [shape: bf16[256,128], index: 6, kind: input, shape index: {}]   ;;  %s1855_s7 = inlined_call_operand.vmem [shape: f32[1,128], index: 7, kind: input, shape index: {}]   ;;  %s1856_s8 = inlined_call_operand.vmem [shape: f32[1,128], index: 8, kind: input, shape index: {}, may-alias: {8,10}]   ;;  %s1857_s9 = inlined_call_operand.vmem [shape: bf16[128,128], index: 9, kind: input, shape index: {}]   ;;  %s1858_s10 = inlined_call_operand.vmem [shape: f32[1,128], index: 10, kind: input, shape index: {}, may-alias: {8,10}]   ;;  %s1859_s11 = inlined_call_operand.vmem [shape: f32[8,128], index: 11, kind: output, shape index: {}]  }
   0x1   :  { %s24_s18 = sshll.u32 %s1475_s17, 4  ;;  %s1451_s21 = scalar_lea.hbm %s1849_s1, 1024  ;;  %s25_s18 = int_to_ptr.vmem [resolvable:$true] %s24_s18 }
   0x2   :  { %p1452_p0 = scmp.ne.s32.totalorder %s1849_s1, %s1451_s21  ;;  %p1455_p1 = scmp.lt.u32.totalorder %s1451_s21, %s1849_s1 }
   0x4   :  { %p1457_p2 = pnand %p1455_p1, %p1452_p0 }
   0x6   :  { %1460 = shalt.err (!%p1457_p2)
}
   0x7   :  { %s1461_s26 = scalar_lea.vmem %s25_s18, 1024  ;;  %p1466_p4 = scmp.lt.s32.totalorder %s25_s18, %s25_s18 }
   0x8   :  { %p1462_p3 = scmp.ne.s32.totalorder %s25_s18, %s1461_s26  ;;  %p1467_p5 = scmp.lt.s32.totalorder %s1461_s26, %s1461_s26 }
   0xa   :  { %p1468_p6 = por %p1467_p5, %p1466_p4 }
   0xc   :  { %p1469_p7 = pnand %p1468_p6, %p1462_p3 }
   0xe   :  { %1472 = shalt.err (!%p1469_p7)
}
   0xf   :  { %s1476_s27 = smov 64   ;;  %s1477_s28 = smov 4  }
  0x10   :  { %30 = dma.hbm_to_vmem [thread:$0]  %s1849_s1, 1024, %s25_s18, [#allocation3], %s1476_s27, %s1476_s27, %s1477_s28  }
  0x11   :  { %1473 = dma.done.wait [#allocation3], 1024  }
  0x12   :  { %1474 = vsyncadd [#allocation3], 4294966272  ;;  %v1478_v0 = vmov 0   ;;  %v55_v1 = vld [vmem:[%s1848_s0 + $0x10] sm:$0xff]  ;;  %v53_v2 = vld [vmem:[%s1848_s0] sm:$0xff]  ;;  %v61_v17 = vlaneseq  ;;  %vm504_vm12 = vcmask 1046528  }
  0x13   :  { %1400 = vset.pattern.permute.xlu1 %v1478_v0  ;;  %1399 = vset.pattern.permute.xlu0 %v1478_v0  ;;  %v56_v3 = vld [vmem:[%s1848_s0 + $0x18] sm:$0xff]  ;;  %v54_v4 = vld [vmem:[%s1848_s0 + $0x8] sm:$0xff]  ;;  %v1401_v5 = vld [vmem:[#allocation2] sm:$0xff]   ;;  %v1479_v23 = vmov 1.0|1.0   ;;  %vm307_vm14 = vcmask 261120  }
  0x14   :  { %352 = vmatprep.mubr.bf16.mxu1 %v1478_v0  ;;  %70 = vperm.xlu1 %1400, %v55_v1   ;;  %v1402_v6 = vld [vmem:[#allocation2 + $0x8] sm:$0xff]   ;;  %v57_v8 = vld [vmem:[%s1848_s0 + $0x20] sm:$0xff]  ;;  %v60_v9 = vld [vmem:[%s1848_s0 + $0x38] sm:$0xff]  ;;  %v62_v20 = vand.u32 127, %v61_v17  ;;  %vm250_vm13 = vsmask.f32 7424 }
  0x15   :  { %64 = vperm.xlu0 %1399, %v53_v2   ;;  %v58_v7 = vld [vmem:[%s1848_s0 + $0x28] sm:$0xff]  ;;  %1315 = vmatprep.subr.bf16.mxu0 %v1401_v5  ;;  %v1403_v10 = vld [vmem:[#allocation2 + $0x10] sm:$0xff]   ;;  %v1404_v12 = vld [vmem:[#allocation2 + $0x18] sm:$0xff]   ;;  %vm901_vm15 = vcmask 1041409  }
  0x16   :  { %1316 = vmatpush3.bf16.msra.mxu0 %v1401_v5  ;;  %v59_v11 = vld [vmem:[%s1848_s0 + $0x30] sm:$0xff]  ;;  %v1405_v13 = vld [vmem:[#allocation2 + $0x20] sm:$0xff]   ;;  %v1406_v14 = vld [vmem:[#allocation2 + $0x28] sm:$0xff]  }
  0x17   :  { %1317 = vmatprep.subr.bf16.mxu0 %v1402_v6  ;;  %v1407_v15 = vld [vmem:[#allocation2 + $0x30] sm:$0xff]   ;;  %v1408_v16 = vld [vmem:[#allocation2 + $0x38] sm:$0xff]   ;;  %v1409_v28 = vld [vmem:[%s1850_s2 + $0x24] ss:$8 sps:$4 sm:$0xff]  }
  0x18   :  { %73 = vperm.xlu1 %1400, %v56_v3   ;;  %v1411_v29 = vld [vmem:[%s1850_s2 + $0x20] ss:$8 sps:$4 sm:$0xff]   ;;  %320 = vmatprep.subr.bf16.mxu1 %v1409_v28  ;;  %v1412_v30 = vld [vmem:[%s1850_s2 + $0x34] ss:$8 sps:$4 sm:$0xff]   ;;  %v1414_v31 = vld [vmem:[%s1850_s2 + $0x30] ss:$8 sps:$4 sm:$0xff]  }
  0x19   :  { %67 = vperm.xlu0 %1399, %v54_v4   ;;  %321 = vmatpush1.bf16.msra.mxu1 %v1411_v29  ;;  %v1417_v32 = vld [vmem:[%s1850_s2 + $0x4] ss:$8 sps:$4 sm:$0xff]   ;;  %v1415_v49 = vld [vmem:[%s1850_s2] ss:$8 sps:$4 sm:$0xff]   ;;  %v1420_v54 = vld [vmem:[%s1850_s2 + $0x14] ss:$8 sps:$4 sm:$0xff]  }
  0x1a   :  { %1318 = vmatpush3.bf16.msra.mxu0 %v1402_v6  ;;  %322 = vmatprep.subr.bf16.mxu1 %v1412_v30  ;;  %v1418_v60 = vld [vmem:[%s1850_s2 + $0x10] ss:$8 sps:$4 sm:$0xff]   ;;  %v1423_v1 = vld [vmem:[%s1850_s2 + $0x44] ss:$8 sps:$4 sm:$0xff]  }
  0x1b   :  { %1319 = vmatprep.subr.bf16.mxu0 %v1403_v10  ;;  %v1435_v28 = vld [vmem:[%s1854_s6 + $0x60] sm:$0xff]   ;;  %v1437_v30 = vld [vmem:[%s1854_s6 + $0x68] sm:$0xff]  }
  0x1c   :  { %79 = vperm.xlu1 %1400, %v58_v7   ;;  %v1436_v29 = vld [vmem:[%s1854_s6 + $0x20] sm:$0xff]  }
  0x1d   :  { %76 = vperm.xlu0 %1399, %v57_v8   ;;  %323 = vmatpush1.bf16.msra.mxu1 %v1414_v31  ;;  %v1438_v31 = vld [vmem:[%s1854_s6 + $0x28] sm:$0xff]  }
  0x1e   :  { %1320 = vmatpush3.bf16.msra.mxu0 %v1403_v10  ;;  %421 = vmatprep.subr.bf16.mxu1 %v1417_v32  ;;  %v1439_v32 = vld [vmem:[%s1854_s6 + $0x70] sm:$0xff]  }
  0x1f   :  { %1321 = vmatprep.subr.bf16.mxu0 %v1404_v12 }
  0x20   :  { %85 = vperm.xlu1 %1400, %v60_v9  }
  0x21   :  { %82 = vperm.xlu0 %1399, %v59_v11  }
  0x22   :  { %1322 = vmatpush3.bf16.msra.mxu0 %v1404_v12  ;;  %v285_v12 = vrot.slane %v1478_v0, 1 }
  0x23   :  { %1323 = vmatprep.subr.bf16.mxu0 %v1405_v13 }
  0x26   :  { %1324 = vmatpush3.bf16.msra.mxu0 %v1405_v13 }
  0x27   :  { %1325 = vmatprep.subr.bf16.mxu0 %v1406_v14 }
  0x2a   :  { %1326 = vmatpush3.bf16.msra.mxu0 %v1406_v14  ;;  %v1421_v14 = vld [vmem:[%s1850_s2 + $0x40] ss:$8 sps:$4 sm:$0xff]  }
  0x2b   :  { %1327 = vmatprep.subr.bf16.mxu0 %v1407_v15 }
  0x2e   :  { %1328 = vmatpush3.bf16.msra.mxu0 %v1407_v15  ;;  %v1426_v15 = vld [vmem:[%s1850_s2 + $0x54] ss:$8 sps:$4 sm:$0xff]  }
  0x2f   :  { %1329 = vmatprep.subr.bf16.mxu0 %v1408_v16 }
  0x32   :  { %1330 = vmatpush3.bf16.msra.mxu0 %v1408_v16  ;;  %v1424_v16 = vld [vmem:[%s1850_s2 + $0x50] ss:$8 sps:$4 sm:$0xff]  }
  0x93   :  { %v71_v18 = vpop.permute.xlu1 %70 }
  0x94   :  { %v65_v19 = vpop.permute.xlu0 %64  ;;  %vm89_vm0 = vcmp.eq.s32.totalorder %v71_v18, %v62_v20  ;;  %v1480_v18 = vmov 0.0|0.0  }
  0x95   :  { %vm87_vm3 = vcmp.eq.s32.totalorder %v65_v19, %v62_v20  ;;  %v512_v19 = vrot.slane %v1480_v18, 1 }
  0x97   :  { %v74_v21 = vpop.permute.xlu1 %73 }
  0x98   :  { %v68_v22 = vpop.permute.xlu0 %67  ;;  %vm90_vm1 = vcmp.eq.s32.totalorder %v74_v21, %v62_v20  ;;  %v1427_v21 = vld [vmem:[%s1854_s6 + $0x40] sm:$0xff]  }
  0x99   :  { %vm88_vm2 = vcmp.eq.s32.totalorder %v68_v22, %v62_v20  ;;  %vm1207_vm4 = vmpackc.low %vm90_vm1, %vm89_vm0  ;;  %v1428_v22 = vld [vmem:[%s1854_s6] sm:$0xff]   ;;  %1284 = vmatprep.subr.bf16.mxu0 %v1427_v21  ;;  %vm903_vm0 = vcmask 1042434   ;;  %vm905_vm1 = vcmask 1043459  }
  0x9a   :  { %vm1205_vm5 = vmpackc.low %vm88_vm2, %vm87_vm3  ;;  %vm907_vm2 = vcmask 1044484   ;;  %vm909_vm3 = vcmask 1045509  }
  0x9b   :  { %1331 = vmatprep.mubr.msk.bf16.mxu0 %vm1205_vm5, %v1479_v23  ;;  %v80_v24 = vpop.permute.xlu1 %79  ;;  %vm913_vm5 = vcmask 1047559  }
  0x9c   :  { %v77_v25 = vpop.permute.xlu0 %76  ;;  %vm92_vm6 = vcmp.eq.s32.totalorder %v80_v24, %v62_v20  ;;  %1332 = vmatmul.mubr.msk.bf16.vlgmr.msra.gmra.mrb[0].mxu0 %vm1207_vm4, %v1479_v23  ;;  %v1431_v24 = vld [vmem:[%s1854_s6 + $0x50] sm:$0xff]   ;;  %vm911_vm4 = vcmask 1046534  }
  0x9d   :  { %vm91_vm7 = vcmp.eq.s32.totalorder %v77_v25, %v62_v20  ;;  %1285 = vmatpush3.bf16.msra.mxu0 %v1428_v22  ;;  %v1432_v25 = vld [vmem:[%s1854_s6 + $0x10] sm:$0xff]  }
  0x9e   :  { %vm1209_vm8 = vmpackc.low %vm92_vm6, %vm91_vm7  ;;  %vm1482_vm6 = vmmov 0  }
  0x9f   :  { %1335 = vmatprep.mubr.msk.bf16.mxu0 %vm1209_vm8, %v1479_v23  ;;  %v86_v26 = vpop.permute.xlu1 %85 }
  0xa0   :  { %v83_v27 = vpop.permute.xlu0 %82  ;;  %vm94_vm9 = vcmp.eq.s32.totalorder %v86_v26, %v62_v20  ;;  %v1433_v26 = vld [vmem:[%s1854_s6 + $0x58] sm:$0xff]  }
  0xa1   :  { %vm93_vm10 = vcmp.eq.s32.totalorder %v83_v27, %v62_v20  ;;  %v1434_v27 = vld [vmem:[%s1854_s6 + $0x18] sm:$0xff]  }
  0xa2   :  { %vm1211_vm11 = vmpackc.low %vm94_vm9, %vm93_vm10 }
  0xa4   :  { %1336 = vmatmul.mubr.msk.bf16.gmra.mrb[4].mxu0 %vm1211_vm11, %v1479_v23  ;;  %v1430_v23 = vld [vmem:[%s1854_s6 + $0x8] sm:$0xff]  }
 0x16f   :  { %v1333_v33 = vpop.f32.mrb[0].mxu0 }
 0x170   :  { %v205_v34 = vpop.f32.mrb[1].mxu0 }
 0x171   :  { %v1334_v35 = vpop.f32.mrb[2].mxu0 }
 0x172   :  { %v1598_v36 = vpack.c.bf16 %v1334_v35, %v1333_v33  ;;  %v208_v37 = vpop.f32.mrb[3].mxu0  ;;  %v1440_v33 = vld [vmem:[%s1854_s6 + $0x30] sm:$0xff]   ;;  %v1442_v35 = vld [vmem:[%s1854_s6 + $0x38] sm:$0xff]  }
 0x173   :  { %v236_v38 = vpack.c.bf16 %v208_v37, %v205_v34  ;;  %v1441_v34 = vld [vmem:[%s1854_s6 + $0x78] sm:$0xff]   ;;  %v638_v37 = vshrl.u32 %v61_v17, 7 }
 0x174   :  { %v506_v39 = vrot.slane %v1598_v36, 1  ;;  %v259_v42 = vshll.u32 %v1598_v36, 16  ;;  %v263_v57 = vshrl.u32 %v1598_v36, 16 }
 0x175   :  { %v254_v40 = vshll.u32 %v236_v38, 16  ;;  %v505_v41 = vrot.slane %v236_v38, 1  ;;  %v252_v43 = vshrl.u32 %v236_v38, 16 }
 0x176   :  { %v261_v51 = vrot.slane %v259_v42, 1 }
 0x177   :  { %v256_v44 = vrot.slane %v254_v40, 1  ;;  %v1337_v45 = vpop.f32.mrb[4].mxu0  ;;  %v507_v46 = vsel %vm504_vm12, %v505_v41, %v506_v39  ;;  %v643_v40 = vsub.s32 1, %v638_v37  ;;  %v663_v41 = vld [vmem:[%s1852_s4] sm:$0x3] }
 0x178   :  { %v221_v47 = vpop.f32.mrb[5].mxu0  ;;  %v265_v63 = vor.u32 %v263_v57, %v261_v51 }
 0x179   :  { %v1338_v48 = vpop.f32.mrb[6].mxu0  ;;  %v257_v50 = vor.u32 %v256_v44, %v252_v43 }
 0x17a   :  { %v239_v52 = vpack.c.bf16 %v1338_v48, %v1337_v45  ;;  %v224_v53 = vpop.f32.mrb[7].mxu0  ;;  %v1725_v48 = vld [vmem:[%s1853_s5] sm:$0xff] }
 0x17b   :  { %v238_v55 = vpack.c.bf16 %v224_v53, %v221_v47  ;;  %v262_v56 = vsel %vm250_vm13, %v257_v50, %v261_v51 }
 0x17c   :  { %1221 = vmatmul.mubr.msk.bf16.vlgmr.msra.gmra.mrb[0].mxu1 %vm307_vm14, %v262_v56  ;;  %v510_v58 = vrot.slane %v239_v52, 1  ;;  %v275_v61 = vshll.u32 %v239_v52, 16  ;;  %v279_v10 = vshrl.u32 %v239_v52, 16 }
 0x17d   :  { %422 = vmatpush1.bf16.msra.mxu1 %v1415_v49  ;;  %362 = vmatprep.mubr.bf16.mxu1 %v1478_v0  ;;  %v267_v59 = vshll.u32 %v238_v55, 16  ;;  %v508_v62 = vrot.slane %v238_v55, 1  ;;  %v271_v2 = vshrl.u32 %v238_v55, 16 }
 0x17e   :  { %423 = vmatprep.subr.bf16.mxu1 %v1420_v54  ;;  %v277_v8 = vrot.slane %v275_v61, 1  ;;  %v513_v20 = vsel %vm504_vm12, %v510_v58, %v512_v19 }
 0x17f   :  { %v269_v3 = vrot.slane %v267_v59, 1  ;;  %v509_v4 = vsel %vm504_vm12, %v506_v39, %v508_v62  ;;  %v511_v5 = vsel %vm504_vm12, %v508_v62, %v510_v58  ;;  %v635_v39 = vld [vmem:[%s1851_s3] sm:$0x3] }
 0x180   :  { %v281_v11 = vor.u32 %v279_v10, %v277_v8  ;;  %v1715_v43 = vrot.slane %v635_v39, %v643_v40 }
 0x181   :  { %v270_v6 = vsel %vm250_vm13, %v265_v63, %v269_v3  ;;  %v273_v7 = vor.u32 %v271_v2, %v269_v3  ;;  %424 = vmatpush1.bf16.msra.mxu1 %v1418_v60 }
 0x182   :  { %546 = vmatprep.subr.bf16.mxu1 %v1423_v1  ;;  %v286_v13 = vsel %vm250_vm13, %v281_v11, %v285_v12 }
 0x183   :  { %v278_v9 = vsel %vm250_vm13, %v273_v7, %v277_v8 }
 0x184   :  { %1222 = vmatmul.mubr.msk.bf16.gmra.mrb[4].mxu1 %vm307_vm14, %v270_v6 }
 0x185   :  { %372 = vmatprep.mubr.bf16.mxu1 %v1478_v0 }
 0x18c   :  { %1223 = vmatmul.mubr.msk.bf16.gmra.mrb[8].mxu1 %vm307_vm14, %v278_v9 }
 0x18d   :  { %382 = vmatprep.mubr.bf16.mxu1 %v1478_v0 }
 0x194   :  { %1224 = vmatmul.mubr.msk.bf16.gmra.mrb[12].mxu1 %vm307_vm14, %v286_v13 }
 0x195   :  { %453 = vmatprep.mubr.bf16.mxu1 %v1478_v0 }
 0x19c   :  { %1229 = vmatmul.mubr.msk.bf16.vlgmr.msra.gmra.mrb[0].mxu1 %vm307_vm14, %v236_v38  ;;  %v639_v38 = vsub.s32 0, %v638_v37 }
 0x19d   :  { %547 = vmatpush1.bf16.msra.mxu1 %v1421_v14  ;;  %463 = vmatprep.mubr.bf16.mxu1 %v1478_v0 }
 0x19e   :  { %548 = vmatprep.subr.bf16.mxu1 %v1426_v15  ;;  %v1713_v42 = vrot.slane %v635_v39, %v639_v38  ;;  %v1717_v44 = vrot.slane %v663_v41, %v639_v38 }
 0x1a1   :  { %549 = vmatpush1.bf16.msra.mxu1 %v1424_v16 }
 0x1a4   :  { %1230 = vmatmul.mubr.msk.bf16.gmra.mrb[4].mxu1 %vm307_vm14, %v1598_v36  ;;  %v1481_v36 = vmov 0.0  }
 0x1a5   :  { %473 = vmatprep.mubr.bf16.mxu1 %v1478_v0 }
 0x1ac   :  { %1231 = vmatmul.mubr.msk.bf16.gmra.mrb[8].mxu1 %vm307_vm14, %v238_v55 }
 0x1ad   :  { %483 = vmatprep.mubr.bf16.mxu1 %v1478_v0 }
 0x1b4   :  { %1232 = vmatmul.mubr.msk.bf16.gmra.mrb[12].mxu1 %vm307_vm14, %v239_v52  ;;  %v1732_v52 = vld [vmem:[%s1853_s5 + $0x8] sm:$0xff] }
 0x1b5   :  { %578 = vmatprep.mubr.bf16.mxu1 %v1478_v0 }
 0x1bc   :  { %1241 = vmatmul.mubr.msk.bf16.vlgmr.msra.gmra.mrb[0].mxu1 %vm307_vm14, %v507_v46  ;;  %v1719_v46 = vrot.slane %v663_v41, %v643_v40 }
 0x1bd   :  { %588 = vmatprep.mubr.bf16.mxu1 %v1478_v0 }
 0x1c4   :  { %1242 = vmatmul.mubr.msk.bf16.gmra.mrb[4].mxu1 %vm307_vm14, %v509_v4 }
 0x1c5   :  { %598 = vmatprep.mubr.bf16.mxu1 %v1478_v0 }
 0x1cc   :  { %1243 = vmatmul.mubr.msk.bf16.gmra.mrb[8].mxu1 %vm307_vm14, %v511_v5 }
 0x1cd   :  { %608 = vmatprep.mubr.bf16.mxu1 %v1478_v0  ;;  %v1429_v0 = vld [vmem:[%s1854_s6 + $0x48] sm:$0xff]  }
 0x1ce   :  { %1286 = vmatprep.subr.bf16.mxu0 %v1429_v0 }
 0x1cf   :  { %1287 = vmatpush3.bf16.msra.mxu0 %v1430_v23 }
 0x1d0   :  { %1288 = vmatprep.subr.bf16.mxu0 %v1431_v24 }
 0x1d3   :  { %1289 = vmatpush3.bf16.msra.mxu0 %v1432_v25 }
 0x1d4   :  { %1244 = vmatmul.mubr.msk.bf16.gmra.mrb[12].mxu1 %vm307_vm14, %v513_v20  ;;  %1290 = vmatprep.subr.bf16.mxu0 %v1433_v26 }
 0x1d7   :  { %1291 = vmatpush3.bf16.msra.mxu0 %v1434_v27 }
 0x1d8   :  { %1292 = vmatprep.subr.bf16.mxu0 %v1435_v28 }
 0x1db   :  { %1293 = vmatpush3.bf16.msra.mxu0 %v1436_v29 }
 0x1dc   :  { %1294 = vmatprep.subr.bf16.mxu0 %v1437_v30 }
 0x1df   :  { %1295 = vmatpush3.bf16.msra.mxu0 %v1438_v31 }
 0x1e0   :  { %1296 = vmatprep.subr.bf16.mxu0 %v1439_v32 }
 0x1e3   :  { %1297 = vmatpush3.bf16.msra.mxu0 %v1440_v33 }
 0x1e4   :  { %1298 = vmatprep.subr.bf16.mxu0 %v1441_v34 }
 0x1e7   :  { %1299 = vmatpush3.bf16.msra.mxu0 %v1442_v35 }
 0x1e8   :  { %1339 = vmatprep.subr.bf16.mxu0 %v1481_v36 }
 0x28f   :  { %v580_v45 = vpop.f32.mrb[0].mxu1 }
 0x290   :  { %v647_v17 = vmul.f32 %v1713_v42, %v580_v45  ;;  %v582_v47 = vpop.f32.mrb[1].mxu1 }
 0x291   :  { %v648_v49 = vmul.f32 %v1715_v43, %v582_v47  ;;  %v584_v50 = vpop.f32.mrb[2].mxu1 }
 0x292   :  { %v675_v51 = vadd.f32 %v1717_v44, %v647_v17  ;;  %v649_v53 = vmul.f32 %v1713_v42, %v584_v50  ;;  %v586_v54 = vpop.f32.mrb[3].mxu1 }
 0x293   :  { %v676_v55 = vadd.f32 %v1719_v46, %v648_v49  ;;  %v650_v56 = vmul.f32 %v1715_v43, %v586_v54 }
 0x294   :  { %v693_v57 = vadd.f32 %v1725_v48, %v675_v51  ;;  %v677_v58 = vadd.f32 %v1717_v44, %v649_v53 }
 0x295   :  { %v694_v59 = vadd.f32 %v1732_v52, %v676_v55  ;;  %v678_v60 = vadd.f32 %v1719_v46, %v650_v56 }
 0x296   :  { %v709_v61 = vmax.f32 %v693_v57, 0.0  ;;  %v695_v62 = vadd.f32 %v1725_v48, %v677_v58 }
 0x297   :  { %v710_v63 = vmax.f32 %v694_v59, 0.0  ;;  %v696_v1 = vadd.f32 %v1732_v52, %v678_v60  ;;  %v590_v2 = vpop.f32.mrb[4].mxu1 }
 0x298   :  { %v725_v3 = vrot.slane %v709_v61, 4  ;;  %v711_v4 = vmax.f32 %v695_v62, 0.0  ;;  %v651_v5 = vmul.f32 %v1713_v42, %v590_v2  ;;  %v592_v6 = vpop.f32.mrb[5].mxu1 }
 0x299   :  { %v731_v7 = vrot.slane %v710_v63, 4  ;;  %v712_v8 = vmax.f32 %v696_v1, 0.0  ;;  %v652_v9 = vmul.f32 %v1715_v43, %v592_v6  ;;  %v594_v10 = vpop.f32.mrb[6].mxu1 }
 0x29a   :  { %v726_v11 = vmax.f32 %v709_v61, %v725_v3  ;;  %v737_v12 = vrot.slane %v711_v4, 4  ;;  %v679_v13 = vadd.f32 %v1717_v44, %v651_v5  ;;  %v653_v14 = vmul.f32 %v1713_v42, %v594_v10  ;;  %v596_v15 = vpop.f32.mrb[7].mxu1 }
 0x29b   :  { %v732_v16 = vmax.f32 %v710_v63, %v731_v7  ;;  %v743_v18 = vrot.slane %v712_v8, 4  ;;  %v680_v19 = vadd.f32 %v1719_v46, %v652_v9  ;;  %v654_v20 = vmul.f32 %v1715_v43, %v596_v15 }
 0x29c   :  { %v727_v21 = vrot.slane %v726_v11, 2  ;;  %v738_v22 = vmax.f32 %v711_v4, %v737_v12  ;;  %v697_v0 = vadd.f32 %v1725_v48, %v679_v13  ;;  %v681_v23 = vadd.f32 %v1717_v44, %v653_v14 }
 0x29d   :  { %v733_v24 = vrot.slane %v732_v16, 2  ;;  %v744_v25 = vmax.f32 %v712_v8, %v743_v18  ;;  %v698_v26 = vadd.f32 %v1732_v52, %v680_v19  ;;  %v682_v27 = vadd.f32 %v1719_v46, %v654_v20 }
 0x29e   :  { %v728_v28 = vmax.f32 %v726_v11, %v727_v21  ;;  %v739_v29 = vrot.slane %v738_v22, 2  ;;  %v713_v30 = vmax.f32 %v697_v0, 0.0  ;;  %v699_v31 = vadd.f32 %v1725_v48, %v681_v23 }
 0x29f   :  { %v734_v32 = vmax.f32 %v732_v16, %v733_v24  ;;  %v745_v33 = vrot.slane %v744_v25, 2  ;;  %v714_v34 = vmax.f32 %v698_v26, 0.0  ;;  %v700_v35 = vadd.f32 %v1732_v52, %v682_v27  ;;  %v600_v37 = vpop.f32.mrb[8].mxu1 }
 0x2a0   :  { %v729_v38 = vrot.slane %v728_v28, 1  ;;  %v740_v39 = vmax.f32 %v738_v22, %v739_v29  ;;  %v749_v40 = vrot.slane %v713_v30, 4  ;;  %v715_v41 = vmax.f32 %v699_v31, 0.0  ;;  %v602_v45 = vpop.f32.mrb[9].mxu1 }
 0x2a1   :  { %v735_v17 = vrot.slane %v734_v32, 1  ;;  %v746_v47 = vmax.f32 %v744_v25, %v745_v33  ;;  %v755_v49 = vrot.slane %v714_v34, 4  ;;  %v716_v50 = vmax.f32 %v700_v35, 0.0  ;;  %v604_v51 = vpop.f32.mrb[10].mxu1 }
 0x2a2   :  { %v730_v53 = vmax.f32 %v728_v28, %v729_v38  ;;  %v741_v54 = vrot.slane %v740_v39, 1  ;;  %v750_v55 = vmax.f32 %v713_v30, %v749_v40  ;;  %v761_v56 = vrot.slane %v715_v41, 4  ;;  %v606_v57 = vpop.f32.mrb[11].mxu1 }
 0x2a3   :  { %v736_v58 = vmax.f32 %v734_v32, %v735_v17  ;;  %v747_v59 = vrot.slane %v746_v47, 1  ;;  %v756_v60 = vmax.f32 %v714_v34, %v755_v49  ;;  %v767_v61 = vrot.slane %v716_v50, 4 }
 0x2a4   :  { %v821_v62 = vpack.c.bf16 %v730_v53, %v730_v53  ;;  %v742_v63 = vmax.f32 %v740_v39, %v741_v54  ;;  %v751_v1 = vrot.slane %v750_v55, 2  ;;  %v762_v2 = vmax.f32 %v715_v41, %v761_v56 }
 0x2a5   :  { %v822_v3 = vpack.c.bf16 %v736_v58, %v736_v58  ;;  %v748_v4 = vmax.f32 %v746_v47, %v747_v59  ;;  %v757_v5 = vrot.slane %v756_v60, 2  ;;  %v768_v6 = vmax.f32 %v716_v50, %v767_v61 }
 0x2a6   :  { %v885_v7 = vunpack.c.l.b16 %v821_v62  ;;  %v823_v8 = vpack.c.bf16 %v742_v63, %v742_v63  ;;  %v752_v9 = vmax.f32 %v750_v55, %v751_v1  ;;  %v763_v10 = vrot.slane %v762_v2, 2 }
 0x2a7   :  { %v886_v11 = vunpack.c.l.b16 %v822_v3  ;;  %v824_v12 = vpack.c.bf16 %v748_v4, %v748_v4  ;;  %v758_v13 = vmax.f32 %v756_v60, %v757_v5  ;;  %v769_v14 = vrot.slane %v768_v6, 2  ;;  %v610_v15 = vpop.f32.mrb[12].mxu1 }
 0x2a8   :  { %v887_v16 = vunpack.c.l.b16 %v823_v8  ;;  %v753_v18 = vrot.slane %v752_v9, 1  ;;  %v764_v19 = vmax.f32 %v762_v2, %v763_v10  ;;  %v655_v20 = vmul.f32 %v1713_v42, %v600_v37  ;;  %v612_v21 = vpop.f32.mrb[13].mxu1 }
 0x2a9   :  { %v888_v22 = vunpack.c.l.b16 %v824_v12  ;;  %v759_v0 = vrot.slane %v758_v13, 1  ;;  %v770_v23 = vmax.f32 %v768_v6, %v769_v14  ;;  %v656_v24 = vmul.f32 %v1715_v43, %v602_v45  ;;  %v614_v25 = vpop.f32.mrb[14].mxu1 }
 0x2aa   :  { %v902_v26 = vsel %vm901_vm15, %v887_v16, %v885_v7  ;;  %v754_v27 = vmax.f32 %v752_v9, %v753_v18  ;;  %v765_v28 = vrot.slane %v764_v19, 1  ;;  %v683_v29 = vadd.f32 %v1717_v44, %v655_v20  ;;  %v616_v30 = vpop.f32.mrb[15].mxu1 }
 0x2ab   :  { %v1760_v31 = vsel %vm901_vm15, %v888_v22, %v886_v11  ;;  %v760_v32 = vmax.f32 %v758_v13, %v759_v0  ;;  %v771_v33 = vrot.slane %v770_v23, 1  ;;  %v684_v34 = vadd.f32 %v1719_v46, %v656_v24 }
 0x2ac   :  { %v825_v35 = vpack.c.bf16 %v754_v27, %v754_v27  ;;  %v766_v37 = vmax.f32 %v764_v19, %v765_v28  ;;  %v701_v38 = vadd.f32 %v1725_v48, %v683_v29  ;;  %v657_v39 = vmul.f32 %v1713_v42, %v604_v51 }
 0x2ad   :  { %v826_v40 = vpack.c.bf16 %v760_v32, %v760_v32  ;;  %v772_v41 = vmax.f32 %v770_v23, %v771_v33  ;;  %v702_v45 = vadd.f32 %v1732_v52, %v684_v34  ;;  %v658_v17 = vmul.f32 %v1715_v43, %v606_v57 }
 0x2ae   :  { %v889_v47 = vunpack.c.l.b16 %v825_v35  ;;  %v827_v49 = vpack.c.bf16 %v766_v37, %v766_v37  ;;  %v717_v50 = vmax.f32 %v701_v38, 0.0  ;;  %v685_v53 = vadd.f32 %v1717_v44, %v657_v39 }
 0x2af   :  { %v1768_v54 = vunpack.c.l.b16 %v826_v40  ;;  %v828_v55 = vpack.c.bf16 %v772_v41, %v772_v41  ;;  %v718_v56 = vmax.f32 %v702_v45, 0.0  ;;  %v686_v58 = vadd.f32 %v1719_v46, %v658_v17 }
 0x2b0   :  { %v1772_v59 = vsel %vm903_vm0, %v889_v47, %v902_v26  ;;  %v1774_v51 = vunpack.c.l.b16 %v827_v49  ;;  %v773_v60 = vrot.slane %v717_v50, 4  ;;  %v703_v61 = vadd.f32 %v1725_v48, %v685_v53 }
 0x2b1   :  { %v1777_v57 = vunpack.c.l.b16 %v828_v55  ;;  %v779_v62 = vrot.slane %v718_v56, 4  ;;  %v704_v63 = vadd.f32 %v1732_v52, %v686_v58  ;;  %v659_v1 = vmul.f32 %v1713_v42, %v610_v15 }
 0x2b2   :  { %v774_v2 = vmax.f32 %v717_v50, %v773_v60  ;;  %v719_v3 = vmax.f32 %v703_v61, 0.0  ;;  %v660_v4 = vmul.f32 %v1715_v43, %v612_v21  ;;  %v661_v5 = vmul.f32 %v1713_v42, %v614_v25 }
 0x2b3   :  { %v780_v6 = vmax.f32 %v718_v56, %v779_v62  ;;  %v720_v7 = vmax.f32 %v704_v63, 0.0  ;;  %v687_v8 = vadd.f32 %v1717_v44, %v659_v1  ;;  %v662_v9 = vmul.f32 %v1715_v43, %v616_v30 }
 0x2b4   :  { %v775_v10 = vrot.slane %v774_v2, 2  ;;  %v785_v11 = vrot.slane %v719_v3, 4  ;;  %v688_v12 = vadd.f32 %v1719_v46, %v660_v4  ;;  %v689_v13 = vadd.f32 %v1717_v44, %v661_v5 }
 0x2b5   :  { %v781_v14 = vrot.slane %v780_v6, 2  ;;  %v791_v15 = vrot.slane %v720_v7, 4  ;;  %v705_v16 = vadd.f32 %v1725_v48, %v687_v8  ;;  %v690_v18 = vadd.f32 %v1719_v46, %v662_v9 }
 0x2b6   :  { %v776_v42 = vmax.f32 %v774_v2, %v775_v10  ;;  %v786_v19 = vmax.f32 %v719_v3, %v785_v11  ;;  %v706_v20 = vadd.f32 %v1732_v52, %v688_v12  ;;  %v707_v21 = vadd.f32 %v1725_v48, %v689_v13 }
 0x2b7   :  { %v782_v43 = vmax.f32 %v780_v6, %v781_v14  ;;  %v792_v22 = vmax.f32 %v720_v7, %v791_v15  ;;  %v721_v0 = vmax.f32 %v705_v16, 0.0  ;;  %v708_v23 = vadd.f32 %v1732_v52, %v690_v18 }
 0x2b8   :  { %v777_v44 = vrot.slane %v776_v42, 1  ;;  %v787_v24 = vrot.slane %v786_v19, 2  ;;  %v722_v25 = vmax.f32 %v706_v20, 0.0  ;;  %v723_v26 = vmax.f32 %v707_v21, 0.0 }
 0x2b9   :  { %v783_v27 = vrot.slane %v782_v43, 1  ;;  %v793_v28 = vrot.slane %v792_v22, 2  ;;  %v797_v46 = vrot.slane %v721_v0, 4  ;;  %v724_v29 = vmax.f32 %v708_v23, 0.0 }
 0x2ba   :  { %v778_v30 = vmax.f32 %v776_v42, %v777_v44  ;;  %v788_v32 = vmax.f32 %v786_v19, %v787_v24  ;;  %v803_v33 = vrot.slane %v722_v25, 4  ;;  %v809_v34 = vrot.slane %v723_v26, 4 }
 0x2bb   :  { %v784_v48 = vmax.f32 %v782_v43, %v783_v27  ;;  %v794_v35 = vmax.f32 %v792_v22, %v793_v28  ;;  %v798_v37 = vmax.f32 %v721_v0, %v797_v46  ;;  %v815_v38 = vrot.slane %v724_v29, 4  ;;  %v1443_v27 = vld [vmem:[%s1857_s9] sm:$0xff]   ;;  %v1444_v46 = vld [vmem:[%s1857_s9 + $0x8] sm:$0xff]  }
 0x2bc   :  { %v829_v39 = vpack.c.bf16 %v778_v30, %v778_v30  ;;  %v789_v40 = vrot.slane %v788_v32, 1  ;;  %v804_v52 = vmax.f32 %v722_v25, %v803_v33  ;;  %v810_v41 = vmax.f32 %v723_v26, %v809_v34  ;;  %v1446_v30 = vld [vmem:[%s1857_s9 + $0x18] sm:$0xff]   ;;  %v1448_v33 = vld [vmem:[%s1857_s9 + $0x28] sm:$0xff]   ;;  %v1449_v34 = vld [vmem:[%s1857_s9 + $0x30] sm:$0xff]  }
 0x2bd   :  { %v830_v45 = vpack.c.bf16 %v784_v48, %v784_v48  ;;  %v795_v17 = vrot.slane %v794_v35, 1  ;;  %v799_v47 = vrot.slane %v798_v37, 2  ;;  %v816_v49 = vmax.f32 %v724_v29, %v815_v38  ;;  %v1445_v29 = vld [vmem:[%s1857_s9 + $0x10] sm:$0xff]   ;;  %v1450_v48 = vld [vmem:[%s1857_s9 + $0x38] sm:$0xff]   ;;  %v1261_v38 = vld [vmem:[%s1855_s7] ss:$0 sm:$0xff] }
 0x2be   :  { %v893_v50 = vunpack.c.l.b16 %v829_v39  ;;  %v790_v53 = vmax.f32 %v788_v32, %v789_v40  ;;  %v805_v55 = vrot.slane %v804_v52, 2  ;;  %v811_v56 = vrot.slane %v810_v41, 2  ;;  %v1447_v32 = vld [vmem:[%s1857_s9 + $0x20] sm:$0xff]  }
 0x2bf   :  { %v894_v58 = vunpack.c.l.b16 %v830_v45  ;;  %v796_v60 = vmax.f32 %v794_v35, %v795_v17  ;;  %v800_v61 = vmax.f32 %v798_v37, %v799_v47  ;;  %v817_v62 = vrot.slane %v816_v49, 2 }
 0x2c0   :  { %v831_v63 = vpack.c.bf16 %v790_v53, %v790_v53  ;;  %v806_v1 = vmax.f32 %v804_v52, %v805_v55  ;;  %v812_v2 = vmax.f32 %v810_v41, %v811_v56  ;;  %v906_v3 = vsel %vm905_vm1, %v1774_v51, %v1772_v59  ;;  %v1262_v52 = vld [vmem:[%s1856_s8] ss:$0 sm:$0xff] }
 0x2c1   :  { %v832_v4 = vpack.c.bf16 %v796_v60, %v796_v60  ;;  %v801_v5 = vrot.slane %v800_v61, 1  ;;  %v818_v6 = vmax.f32 %v816_v49, %v817_v62  ;;  %v908_v7 = vsel %vm907_vm2, %v893_v50, %v906_v3 }
 0x2c2   :  { %v895_v8 = vunpack.c.l.b16 %v831_v63  ;;  %v807_v9 = vrot.slane %v806_v1, 1  ;;  %v813_v10 = vrot.slane %v812_v2, 1  ;;  %v916_v11 = vsel %vm903_vm0, %v1768_v54, %v1760_v31 }
 0x2c3   :  { %v896_v12 = vunpack.c.l.b16 %v832_v4  ;;  %v802_v13 = vmax.f32 %v800_v61, %v801_v5  ;;  %v819_v14 = vrot.slane %v818_v6, 1  ;;  %v917_v15 = vsel %vm905_vm1, %v1777_v57, %v916_v11 }
 0x2c4   :  { %v808_v16 = vmax.f32 %v806_v1, %v807_v9  ;;  %v814_v59 = vmax.f32 %v812_v2, %v813_v10  ;;  %v910_v51 = vsel %vm909_vm3, %v895_v8, %v908_v7  ;;  %v918_v18 = vsel %vm907_vm2, %v894_v58, %v917_v15 }
 0x2c5   :  { %v833_v42 = vpack.c.bf16 %v802_v13, %v802_v13  ;;  %v820_v19 = vmax.f32 %v818_v6, %v819_v14  ;;  %v919_v20 = vsel %vm909_vm3, %v896_v12, %v918_v18 }
 0x2c6   :  { %v835_v21 = vpack.c.bf16 %v814_v59, %v814_v59  ;;  %v834_v43 = vpack.c.bf16 %v808_v16, %v808_v16 }
 0x2c7   :  { %v897_v31 = vunpack.c.l.b16 %v833_v42  ;;  %v836_v54 = vpack.c.bf16 %v820_v19, %v820_v19 }
 0x2c8   :  { %v899_v22 = vunpack.c.l.b16 %v835_v21  ;;  %v898_v0 = vunpack.c.l.b16 %v834_v43 }
 0x2c9   :  { %v900_v23 = vunpack.c.l.b16 %v836_v54  ;;  %v912_v57 = vsel %vm911_vm4, %v897_v31, %v910_v51 }
 0x2ca   :  { %v914_v44 = vsel %vm913_vm5, %v899_v22, %v912_v57  ;;  %v920_v24 = vsel %vm911_vm4, %v898_v0, %v919_v20 }
 0x2cb   :  { %v921_v25 = vsel %vm913_vm5, %v900_v23, %v920_v24  ;;  %v922_v28 = vpack.c.b16 %v914_v44, %v914_v44 }
 0x2cc   :  { %v923_v26 = vpack.c.b16 %v921_v25, %v921_v25 }
 0x2ce   :  { %1054 = vmatprep.mubr.bf16.mxu0 %v923_v26 }
 0x2cf   :  { %1055 = vmatmul.mubr.bf16.vlgmr.msra.gmra.mrb[8].mxu0 %v922_v28 }
 0x2d0   :  { %1340 = vmatpush3.bf16.msra.mxu0 %v1443_v27  ;;  %1355 = vmatprep.mubr.msk.bf16.mxu0 %vm1482_vm6, %v1481_v36 }
 0x2d1   :  { %1341 = vmatprep.subr.bf16.mxu0 %v1481_v36 }
 0x2d4   :  { %1342 = vmatpush3.bf16.msra.mxu0 %v1444_v46 }
 0x2d5   :  { %1343 = vmatprep.subr.bf16.mxu0 %v1481_v36 }
 0x2d8   :  { %1344 = vmatpush3.bf16.msra.mxu0 %v1445_v29 }
 0x2d9   :  { %1345 = vmatprep.subr.bf16.mxu0 %v1481_v36 }
 0x2dc   :  { %1346 = vmatpush3.bf16.msra.mxu0 %v1446_v30 }
 0x2dd   :  { %1347 = vmatprep.subr.bf16.mxu0 %v1481_v36 }
 0x2e0   :  { %1348 = vmatpush3.bf16.msra.mxu0 %v1447_v32 }
 0x2e1   :  { %1349 = vmatprep.subr.bf16.mxu0 %v1481_v36 }
 0x2e4   :  { %1350 = vmatpush3.bf16.msra.mxu0 %v1448_v33 }
 0x2e5   :  { %1351 = vmatprep.subr.bf16.mxu0 %v1481_v36 }
 0x2e8   :  { %1352 = vmatpush3.bf16.msra.mxu0 %v1449_v34 }
 0x2e9   :  { %1353 = vmatprep.subr.bf16.mxu0 %v1481_v36  ;;  %v1263_v36 = vld [vmem:[%s1858_s10] ss:$0 sm:$0xff] }
 0x2ec   :  { %1354 = vmatpush3.bf16.msra.mxu0 %v1450_v48 }
 0x3a2   :  { %v1300_v35 = vpop.f32.mrb[8].mxu0 }
 0x3a3   :  { %v1301_v37 = vpop.f32.mrb[9].mxu0 }
 0x3a4   :  { %v1302_v39 = vadd.f32 %v1301_v37, %v1300_v35  ;;  %v1303_v40 = vpop.f32.mrb[10].mxu0 }
 0x3a5   :  { %v1304_v41 = vpop.f32.mrb[11].mxu0 }
 0x3a6   :  { %v1069_v45 = vmul.f32 %v1302_v39, %v1261_v38 }
 0x3a8   :  { %v1077_v17 = vadd.f32 %v1262_v52, %v1069_v45 }
 0x3aa   :  { %v1078_v47 = vmax.f32 %v1077_v17, 0.0 }
 0x3ac   :  { %v1079_v49 = vpack.c.bf16 %v1078_v47, %v1078_v47 }
 0x3ae   :  { %1356 = vmatmul.mubr.bf16.vlgmr.msra.gmra.mrb[12].mxu0 %v1079_v49 }
 0x481   :  { %v1185_v50 = vpop.f32.mrb[12].mxu0 }
 0x482   :  { %v1186_v53 = vadd.f32 %v1263_v36, %v1185_v50  ;;  %v1357_v55 = vpop.f32.mrb[13].mxu0 }
 0x483   :  { %v1188_v56 = vpop.f32.mrb[14].mxu0 }
 0x484   :  { %1191 = vst [vmem:[%s1859_s11] sm:$0xff] %v1186_v53  ;;  %v1358_v58 = vpop.f32.mrb[15].mxu0 }
 0x485   :  { %1196 = vsyncpa [#allocation3], 1 }

</bundles_post_ra>
